<compile_context>
chip_gen: v6e
topology: v6e:2x2x1
jax: 0.10.0
libtpu: 0.0.40
codegen_flags: <defaults>
</compile_context>

<pallas_src>
import functools

import jax
import jax.numpy as jnp
from jax.experimental import pallas as pl
from jax.experimental.pallas import tpu as pltpu

HIDDEN = 256
LN_EPS = 1e-5  # nn.LayerNorm default


def _round_up(x, m):
    return ((x + m - 1) // m) * m


def _layer_norm(h, gamma, beta):
    # Two-pass variance (matches nn.LayerNorm exactly; avoids cancellation).
    mu = jnp.mean(h, axis=-1, keepdims=True)
    d = h - mu
    var = jnp.mean(d * d, axis=-1, keepdims=True)
    return d * jax.lax.rsqrt(var + LN_EPS) * gamma + beta


def _actor_kernel(x_ref, w1_ref, w2_ref, w3_ref, vec_ref, o_ref, *, a_pad):
    f32 = jnp.float32
    mm_dtype = w1_ref.dtype  # f32 (default) or bf16 (opt-in)

    # Hoisted parameter-slab reads (static, lane-aligned slices).
    b1 = vec_ref[0:1, :]
    g1 = vec_ref[1:2, :]
    be1 = vec_ref[2:3, :]
    b2 = vec_ref[3:4, :]
    g2 = vec_ref[4:5, :]
    be2 = vec_ref[5:6, :]
    b3 = vec_ref[6:7, :a_pad]

    # Input block is (TB, state_dim) — unpadded K; Mosaic pads the contraction
    # dim internally, so no HBM-side K padding is needed.
    x = x_ref[...].astype(mm_dtype)

    # ---- Linear 1 + LayerNorm + ReLU --------------------------------------
    h = jnp.dot(x, w1_ref[...], preferred_element_type=f32) + b1
    h = jnp.maximum(_layer_norm(h, g1, be1), 0.0)

    # ---- Linear 2 + LayerNorm + ReLU --------------------------------------
    h = jnp.dot(h.astype(mm_dtype), w2_ref[...], preferred_element_type=f32) + b2
    h = jnp.maximum(_layer_norm(h, g2, be2), 0.0)

    # ---- Linear 3 + Tanh ---------------------------------------------------
    # Padded output lanes carry zero weights/bias; tanh over the extra lanes
    # rides the otherwise-idle EUP slot and buys an unmasked full-lane store.
    out = jnp.dot(h.astype(mm_dtype), w3_ref[...], preferred_element_type=f32) + b3
    o_ref[...] = jnp.tanh(out)  # (TB, A_PAD)


def prepare_params(params, *, matmul_dtype=jnp.float32):
    """One-time packing of parameters into kernel-ready slabs.

    Call once and reuse the result across forward calls — this is where all
    padding / packing XLA ops live, keeping the per-call path to a single
    pallas_call (plus a final slice).
    """
    state_dim = params["w1"].shape[0]
    action_dim = params["w3"].shape[1]
    a_pad = _round_up(max(action_dim, 1), 128)
    assert a_pad <= HIDDEN, "b3 is packed inside the (8, HIDDEN) slab"

    f32 = jnp.float32
    w1 = params["w1"].astype(matmul_dtype)                    # (state_dim, 256)
    w2 = params["w2"].astype(matmul_dtype)                    # (256, 256)
    w3 = (jnp.zeros((HIDDEN, a_pad), f32)
          .at[:, :action_dim].set(params["w3"].astype(f32))
          .astype(matmul_dtype))                              # (256, A_PAD)

    # Pack the 7 small vectors (biases + LN gamma/beta) into one (8,256) slab.
    vec = jnp.zeros((8, HIDDEN), f32)
    vec = vec.at[0, :].set(params["b1"].reshape(-1))
    vec = vec.at[1, :].set(params["g1"].reshape(-1))
    vec = vec.at[2, :].set(params["be1"].reshape(-1))
    vec = vec.at[3, :].set(params["b2"].reshape(-1))
    vec = vec.at[4, :].set(params["g2"].reshape(-1))
    vec = vec.at[5, :].set(params["be2"].reshape(-1))
    vec = vec.at[6, :action_dim].set(params["b3"].reshape(-1))

    return {
        "w1": w1, "w2": w2, "w3": w3, "vec": vec,
        "state_dim": state_dim, "action_dim": action_dim, "a_pad": a_pad,
    }


def _choose_tile_b(B):
    if B <= 256:
        # Small batch: single grid step, no padding overhead beyond 8-row align.
        return max(8, _round_up(B, 8))
    # Large batch: big tiles for HBM-roofline efficiency, but keep >= 4 grid
    # steps so both v7x TensorCores get >= 2 steps each and can pipeline.
    tile = 1024
    while tile > 128 and pl.cdiv(B, tile) < 4:
        tile //= 2
    return tile


def actor_forward(state, prepared, *, tile_b=None):
    """state: (B, state_dim) float32 -> (B, action_dim) float32."""
    B, state_dim = state.shape
    assert state_dim == prepared["state_dim"]
    action_dim = prepared["action_dim"]
    a_pad = prepared["a_pad"]
    f32 = jnp.float32

    if tile_b is None:
        tile_b = _choose_tile_b(B)
    tile_b = max(8, _round_up(tile_b, 8))
    B_pad = _round_up(B, tile_b)

    x = state.astype(f32)
    if B_pad != B:
        # Row-only padding (state_dim lanes wide) — no lane inflation.
        x = jnp.pad(x, ((0, B_pad - B), (0, 0)))

    grid = (B_pad // tile_b,)

    in_specs = [
        pl.BlockSpec((tile_b, state_dim), lambda i: (i, 0)),   # x (full last dim)
        pl.BlockSpec((state_dim, HIDDEN), lambda i: (0, 0)),   # w1 (unpadded K)
        pl.BlockSpec((HIDDEN, HIDDEN), lambda i: (0, 0)),      # w2
        pl.BlockSpec((HIDDEN, a_pad), lambda i: (0, 0)),       # w3 (lane-padded N)
        pl.BlockSpec((8, HIDDEN), lambda i: (0, 0)),           # bias/LN slab
    ]
    out_spec = pl.BlockSpec((tile_b, a_pad), lambda i: (i, 0))

    flops = 2 * B_pad * (state_dim * HIDDEN + HIDDEN * HIDDEN + HIDDEN * a_pad)
    transcendentals = B_pad * (2 + a_pad)  # 2 rsqrt per row + tanh per lane
    bytes_accessed = 4 * (
        B_pad * state_dim + state_dim * HIDDEN + HIDDEN * HIDDEN
        + HIDDEN * a_pad + 8 * HIDDEN + B_pad * a_pad
    )

    out_padded = pl.pallas_call(
        functools.partial(_actor_kernel, a_pad=a_pad),
        out_shape=jax.ShapeDtypeStruct((B_pad, a_pad), f32),
        grid=grid,
        in_specs=in_specs,
        out_specs=out_spec,
        compiler_params=pltpu.CompilerParams(
            dimension_semantics=("parallel",),
        ),
        cost_estimate=pl.CostEstimate(
            flops=flops,
            transcendentals=transcendentals,
            bytes_accessed=bytes_accessed,
        ),
    )(x, prepared["w1"], prepared["w2"], prepared["w3"], prepared["vec"])

    # TODO(synk): if downstream ops can consume the padded (B_pad, 128) layout,
    # skip this slice to avoid re-reading the padded slab at very large B.
    return out_padded[:B, :action_dim]


def init_params(key, state_dim, action_dim):
    """Deterministic synthetic init (PyTorch-like uniform fan-in scaling)."""
    ks = jax.random.split(key, 6)

    def lin(kw, kb, fan_in, fan_out):
        lim = 1.0 / jnp.sqrt(jnp.float32(fan_in))
        w = jax.random.uniform(kw, (fan_in, fan_out), jnp.float32, -lim, lim)
        b = jax.random.uniform(kb, (1, fan_out), jnp.float32, -lim, lim)
        return w, b

    w1, b1 = lin(ks[0], ks[1], state_dim, HIDDEN)
    w2, b2 = lin(ks[2], ks[3], HIDDEN, HIDDEN)
    w3, b3 = lin(ks[4], ks[5], HIDDEN, action_dim)
    return {
        "w1": w1, "b1": b1,
        "g1": jnp.ones((1, HIDDEN), jnp.float32),
        "be1": jnp.zeros((1, HIDDEN), jnp.float32),
        "w2": w2, "b2": b2,
        "g2": jnp.ones((1, HIDDEN), jnp.float32),
        "be2": jnp.zeros((1, HIDDEN), jnp.float32),
        "w3": w3, "b3": b3,
    }


def actor_ref(state, p):
    """Pure-JAX reference of the PyTorch forward (two-pass LN, as nn.LayerNorm)."""
    def ln(h, g, b):
        mu = jnp.mean(h, axis=-1, keepdims=True)
        var = jnp.mean((h - mu) ** 2, axis=-1, keepdims=True)
        return (h - mu) * jax.lax.rsqrt(var + LN_EPS) * g + b

    h = jnp.maximum(ln(state @ p["w1"] + p["b1"], p["g1"], p["be1"]), 0.0)
    h = jnp.maximum(ln(h @ p["w2"] + p["b2"], p["g2"], p["be2"]), 0.0)
    return jnp.tanh(h @ p["w3"] + p["b3"])


if __name__ == "__main__":
    # HalfCheetah-v5: observation dim 17, action dim 6.  Small batch for test.
    STATE_DIM, ACTION_DIM, BATCH = 17, 6, 8

    key = jax.random.PRNGKey(0)
    k_param, k_x = jax.random.split(key)
    params = init_params(k_param, STATE_DIM, ACTION_DIM)
    state = jax.random.normal(k_x, (BATCH, STATE_DIM), jnp.float32)

    # One-time parameter packing (kept out of the per-call hot path).
    prepared = prepare_params(params)  # matmul_dtype=jnp.bfloat16 for MXU-bound cases
    prepared = jax.tree_util.tree_map(
        lambda v: jax.block_until_ready(v) if isinstance(v, jax.Array) else v,
        prepared,
    )

    out = actor_forward(state, prepared)
    out = jax.block_until_ready(out)

    ref = actor_ref(state, params)
    assert out.shape == (BATCH, ACTION_DIM)
    assert jnp.allclose(out, ref, atol=1e-4, rtol=1e-4), (
        f"max err {jnp.max(jnp.abs(out - ref))}"
    )
    print("KERNEL_OK")
</pallas_src>

<mosaic_0001>
module attributes {stable_mosaic.version = 11 : i64} {
  func.func @_actor_kernel(%arg0: i32, %arg1: memref<8x17xf32, #tpu.memory_space<vmem>>, %arg2: memref<17x256xf32, #tpu.memory_space<vmem>>, %arg3: memref<256x256xf32, #tpu.memory_space<vmem>>, %arg4: memref<256x128xf32, #tpu.memory_space<vmem>>, %arg5: memref<8x256xf32, #tpu.memory_space<vmem>>, %arg6: memref<8x128xf32, #tpu.memory_space<vmem>>) attributes {dimension_semantics = [#tpu.dimension_semantics<parallel>], iteration_bounds = array<i64: 1>, scalar_prefetch = 0 : i64, scratch_operands = 0 : i64, tpu.core_type = #tpu.core_type<tc>, window_params = [{transform_indices = @transform_0, window_bounds = array<i64: 8, 17>}, {pipeline_mode = #tpu.pipeline_mode<synchronous>, transform_indices = @transform_1, window_bounds = array<i64: 17, 256>}, {pipeline_mode = #tpu.pipeline_mode<synchronous>, transform_indices = @transform_2, window_bounds = array<i64: 256, 256>}, {pipeline_mode = #tpu.pipeline_mode<synchronous>, transform_indices = @transform_3, window_bounds = array<i64: 256, 128>}, {pipeline_mode = #tpu.pipeline_mode<synchronous>, transform_indices = @transform_4, window_bounds = array<i64: 8, 256>}, {transform_indices = @transform_5, window_bounds = array<i64: 8, 128>}]} {
    %c0 = arith.constant 0 : index
    %c0_0 = arith.constant 0 : index
    %0 = vector.load %arg5[%c0, %c0_0] : memref<8x256xf32, #tpu.memory_space<vmem>>, vector<1x256xf32>
    %c1 = arith.constant 1 : index
    %c0_1 = arith.constant 0 : index
    %1 = vector.load %arg5[%c1, %c0_1] : memref<8x256xf32, #tpu.memory_space<vmem>>, vector<1x256xf32>
    %c2 = arith.constant 2 : index
    %c0_2 = arith.constant 0 : index
    %2 = vector.load %arg5[%c2, %c0_2] : memref<8x256xf32, #tpu.memory_space<vmem>>, vector<1x256xf32>
    %c3 = arith.constant 3 : index
    %c0_3 = arith.constant 0 : index
    %3 = vector.load %arg5[%c3, %c0_3] : memref<8x256xf32, #tpu.memory_space<vmem>>, vector<1x256xf32>
    %c4 = arith.constant 4 : index
    %c0_4 = arith.constant 0 : index
    %4 = vector.load %arg5[%c4, %c0_4] : memref<8x256xf32, #tpu.memory_space<vmem>>, vector<1x256xf32>
    %c5 = arith.constant 5 : index
    %c0_5 = arith.constant 0 : index
    %5 = vector.load %arg5[%c5, %c0_5] : memref<8x256xf32, #tpu.memory_space<vmem>>, vector<1x256xf32>
    %c6 = arith.constant 6 : index
    %c0_6 = arith.constant 0 : index
    %6 = vector.load %arg5[%c6, %c0_6] : memref<8x256xf32, #tpu.memory_space<vmem>>, vector<1x128xf32>
    %c0_7 = arith.constant 0 : index
    %c0_8 = arith.constant 0 : index
    %7 = vector.load %arg1[%c0_7, %c0_8] : memref<8x17xf32, #tpu.memory_space<vmem>>, vector<8x17xf32>
    %c0_9 = arith.constant 0 : index
    %c0_10 = arith.constant 0 : index
    %8 = vector.load %arg2[%c0_9, %c0_10] : memref<17x256xf32, #tpu.memory_space<vmem>>, vector<17x256xf32>
    %cst = arith.constant dense<0.000000e+00> : vector<8x256xf32>
    %9 = tpu.matmul %7, %8, %cst {dimension_numbers = #tpu.dot_dimension_numbers<[1], [0], [0], [1], [0, 0, 1, 1], [], []>} : vector<8x17xf32>, vector<17x256xf32>, vector<8x256xf32> -> vector<8x256xf32>
    %10 = vector.broadcast %0 : vector<1x256xf32> to vector<8x256xf32>
    %11 = arith.addf %9, %10 : vector<8x256xf32>
    %cst_11 = arith.constant dense<0.000000e+00> : vector<8xf32>
    %12 = vector.multi_reduction <add>, %11, %cst_11 [1] : vector<8x256xf32> to vector<8xf32>
    %13 = vector.shape_cast %12 : vector<8xf32> to vector<8x1xf32>
    %cst_12 = arith.constant 2.560000e+02 : f32
    %14 = vector.broadcast %cst_12 : f32 to vector<8x1xf32>
    %15 = arith.divf %13, %14 : vector<8x1xf32>
    %16 = vector.broadcast %15 : vector<8x1xf32> to vector<8x256xf32>
    %17 = arith.subf %11, %16 : vector<8x256xf32>
    %18 = arith.mulf %17, %17 : vector<8x256xf32>
    %cst_13 = arith.constant dense<0.000000e+00> : vector<8xf32>
    %19 = vector.multi_reduction <add>, %18, %cst_13 [1] : vector<8x256xf32> to vector<8xf32>
    %20 = vector.shape_cast %19 : vector<8xf32> to vector<8x1xf32>
    %cst_14 = arith.constant 2.560000e+02 : f32
    %21 = vector.broadcast %cst_14 : f32 to vector<8x1xf32>
    %22 = arith.divf %20, %21 : vector<8x1xf32>
    %cst_15 = arith.constant 9.99999974E-6 : f32
    %23 = vector.broadcast %cst_15 : f32 to vector<8x1xf32>
    %24 = arith.addf %22, %23 : vector<8x1xf32>
    %25 = math.rsqrt %24 : vector<8x1xf32>
    %26 = vector.broadcast %25 : vector<8x1xf32> to vector<8x256xf32>
    %27 = arith.mulf %17, %26 : vector<8x256xf32>
    %28 = vector.broadcast %1 : vector<1x256xf32> to vector<8x256xf32>
    %29 = arith.mulf %27, %28 : vector<8x256xf32>
    %30 = vector.broadcast %2 : vector<1x256xf32> to vector<8x256xf32>
    %31 = arith.addf %29, %30 : vector<8x256xf32>
    %cst_16 = arith.constant 0.000000e+00 : f32
    %32 = vector.broadcast %cst_16 : f32 to vector<8x256xf32>
    %33 = arith.maximumf %31, %32 : vector<8x256xf32>
    %c0_17 = arith.constant 0 : index
    %c0_18 = arith.constant 0 : index
    %34 = vector.load %arg3[%c0_17, %c0_18] : memref<256x256xf32, #tpu.memory_space<vmem>>, vector<256x256xf32>
    %cst_19 = arith.constant dense<0.000000e+00> : vector<8x256xf32>
    %35 = tpu.matmul %33, %34, %cst_19 {dimension_numbers = #tpu.dot_dimension_numbers<[1], [0], [0], [1], [0, 0, 1, 1], [], []>} : vector<8x256xf32>, vector<256x256xf32>, vector<8x256xf32> -> vector<8x256xf32>
    %36 = vector.broadcast %3 : vector<1x256xf32> to vector<8x256xf32>
    %37 = arith.addf %35, %36 : vector<8x256xf32>
    %cst_20 = arith.constant dense<0.000000e+00> : vector<8xf32>
    %38 = vector.multi_reduction <add>, %37, %cst_20 [1] : vector<8x256xf32> to vector<8xf32>
    %39 = vector.shape_cast %38 : vector<8xf32> to vector<8x1xf32>
    %cst_21 = arith.constant 2.560000e+02 : f32
    %40 = vector.broadcast %cst_21 : f32 to vector<8x1xf32>
    %41 = arith.divf %39, %40 : vector<8x1xf32>
    %42 = vector.broadcast %41 : vector<8x1xf32> to vector<8x256xf32>
    %43 = arith.subf %37, %42 : vector<8x256xf32>
    %44 = arith.mulf %43, %43 : vector<8x256xf32>
    %cst_22 = arith.constant dense<0.000000e+00> : vector<8xf32>
    %45 = vector.multi_reduction <add>, %44, %cst_22 [1] : vector<8x256xf32> to vector<8xf32>
    %46 = vector.shape_cast %45 : vector<8xf32> to vector<8x1xf32>
    %cst_23 = arith.constant 2.560000e+02 : f32
    %47 = vector.broadcast %cst_23 : f32 to vector<8x1xf32>
    %48 = arith.divf %46, %47 : vector<8x1xf32>
    %cst_24 = arith.constant 9.99999974E-6 : f32
    %49 = vector.broadcast %cst_24 : f32 to vector<8x1xf32>
    %50 = arith.addf %48, %49 : vector<8x1xf32>
    %51 = math.rsqrt %50 : vector<8x1xf32>
    %52 = vector.broadcast %51 : vector<8x1xf32> to vector<8x256xf32>
    %53 = arith.mulf %43, %52 : vector<8x256xf32>
    %54 = vector.broadcast %4 : vector<1x256xf32> to vector<8x256xf32>
    %55 = arith.mulf %53, %54 : vector<8x256xf32>
    %56 = vector.broadcast %5 : vector<1x256xf32> to vector<8x256xf32>
    %57 = arith.addf %55, %56 : vector<8x256xf32>
    %cst_25 = arith.constant 0.000000e+00 : f32
    %58 = vector.broadcast %cst_25 : f32 to vector<8x256xf32>
    %59 = arith.maximumf %57, %58 : vector<8x256xf32>
    %c0_26 = arith.constant 0 : index
    %c0_27 = arith.constant 0 : index
    %60 = vector.load %arg4[%c0_26, %c0_27] : memref<256x128xf32, #tpu.memory_space<vmem>>, vector<256x128xf32>
    %cst_28 = arith.constant dense<0.000000e+00> : vector<8x128xf32>
    %61 = tpu.matmul %59, %60, %cst_28 {dimension_numbers = #tpu.dot_dimension_numbers<[1], [0], [0], [1], [0, 0, 1, 1], [], []>} : vector<8x256xf32>, vector<256x128xf32>, vector<8x128xf32> -> vector<8x128xf32>
    %62 = vector.broadcast %6 : vector<1x128xf32> to vector<8x128xf32>
    %63 = arith.addf %61, %62 : vector<8x128xf32>
    %64 = math.tanh %63 : vector<8x128xf32>
    %c0_29 = arith.constant 0 : index
    %c0_30 = arith.constant 0 : index
    %65 = vector.load %arg6[%c0_29, %c0_30] : memref<8x128xf32, #tpu.memory_space<vmem>>, vector<8x128xf32>
    tpu.vector_store %arg6[%c0_29, %c0_30], %64 {strides = array<i32>} : memref<8x128xf32, #tpu.memory_space<vmem>>, vector<8x128xf32>,
    return
  }
  func.func @transform_0(%arg0: i32) -> (i32, i32) {
    %c0_i32 = arith.constant 0 : i32
    %c0_i32_0 = arith.constant 0 : i32
    return %arg0, %c0_i32 : i32, i32
  }
  func.func @transform_1(%arg0: i32) -> (i32, i32) {
    %c0_i32 = arith.constant 0 : i32
    %c0_i32_0 = arith.constant 0 : i32
    %c0_i32_1 = arith.constant 0 : i32
    return %c0_i32, %c0_i32_0 : i32, i32
  }
  func.func @transform_2(%arg0: i32) -> (i32, i32) {
    %c0_i32 = arith.constant 0 : i32
    %c0_i32_0 = arith.constant 0 : i32
    %c0_i32_1 = arith.constant 0 : i32
    return %c0_i32, %c0_i32_0 : i32, i32
  }
  func.func @transform_3(%arg0: i32) -> (i32, i32) {
    %c0_i32 = arith.constant 0 : i32
    %c0_i32_0 = arith.constant 0 : i32
    %c0_i32_1 = arith.constant 0 : i32
    return %c0_i32, %c0_i32_0 : i32, i32
  }
  func.func @transform_4(%arg0: i32) -> (i32, i32) {
    %c0_i32 = arith.constant 0 : i32
    %c0_i32_0 = arith.constant 0 : i32
    %c0_i32_1 = arith.constant 0 : i32
    return %c0_i32, %c0_i32_0 : i32, i32
  }
  func.func @transform_5(%arg0: i32) -> (i32, i32) {
    %c0_i32 = arith.constant 0 : i32
    %c0_i32_0 = arith.constant 0 : i32
    return %arg0, %c0_i32 : i32, i32
  }
}

</mosaic_0001>

<bundles_post_ra>
// kernel: tpu_custom_call.1
= control target key start
LH: loop header
LB: loop body
LE: loop exit
PB: predicated region body
PF: predicated region fallthrough
CT: control target
= control target key end

     0   :  { %10 = vsyncpa [#allocation3], 0  ;;  %s845_s0 = inlined_call_operand.hbm [shape: f32[8,17], index: 0, kind: input, shape index: {}]   ;;  %s846_s1 = inlined_call_operand.hbm [shape: f32[17,256], index: 1, kind: input, shape index: {}]   ;;  %s847_s2 = inlined_call_operand.hbm [shape: f32[256,256], index: 2, kind: input, shape index: {}]   ;;  %s848_s3 = inlined_call_operand.hbm [shape: f32[256,128], index: 3, kind: input, shape index: {}]   ;;  %s849_s4 = inlined_call_operand.hbm [shape: f32[8,256], index: 4, kind: input, shape index: {}]   ;;  %s850_s5 = inlined_call_operand.hbm [shape: f32[8,128], index: 5, kind: output, shape index: {}]  }
   0x1   :  { %11 = vsyncpa [#allocation6], 0 }
   0x2   :  { %12 = vsyncpa [#allocation9], 0 }
   0x3   :  { %13 = vsyncpa [#allocation4], 0  ;;  %s736_s18 = smov [#allocation5]  }
   0x4   :  { %s29_s19 = sshll.u32 %s736_s18, 4  ;;  %s30_s19 = int_to_ptr.vmem [resolvable:$true] %s29_s19 }
   0x5   :  { %s616_s20 = scalar_lea.vmem %s30_s19, 768  ;;  %p621_p1 = scmp.lt.s32.totalorder %s30_s19, %s30_s19 }
   0x6   :  { %p617_p0 = scmp.ne.s32.totalorder %s30_s19, %s616_s20  ;;  %p622_p2 = scmp.lt.s32.totalorder %s616_s20, %s616_s20 }
   0x8   :  { %p623_p3 = por %p622_p2, %p621_p1 }
   0xa   :  { %p624_p4 = pnand %p623_p3, %p617_p0 }
   0xc   :  { %627 = shalt.err (!%p624_p4)
}
   0xd   :  { %s737_s21 = smov 256   ;;  %s738_s22 = smov 16  }
   0xe   :  { %35 = dma.hbm_to_vmem [thread:$0]  %s846_s1, 768, %s30_s19, [#allocation6], %s737_s21, %s737_s21, %s738_s22  }
   0xf   :  { %s739_s25 = smov [#allocation8]  }
  0x10   :  { %s53_s26 = sshll.u32 %s739_s25, 4  ;;  %s54_s26 = int_to_ptr.vmem [resolvable:$true] %s53_s26 }
  0x11   :  { %s636_s27 = scalar_lea.vmem %s54_s26, 4096  ;;  %p641_p6 = scmp.lt.s32.totalorder %s54_s26, %s54_s26 }
  0x12   :  { %p637_p5 = scmp.ne.s32.totalorder %s54_s26, %s636_s27  ;;  %p642_p7 = scmp.lt.s32.totalorder %s636_s27, %s636_s27 }
  0x14   :  { %p643_p8 = por %p642_p7, %p641_p6 }
  0x16   :  { %p644_p9 = pnand %p643_p8, %p637_p5 }
  0x18   :  { %647 = shalt.err (!%p644_p9)
}
  0x19   :  { %s740_s28 = smov 128   ;;  %s741_s29 = smov 8  }
  0x1a   :  { %59 = dma.hbm_to_vmem [thread:$0]  %s848_s3, 4096, %s54_s26, [#allocation9], %s740_s28, %s740_s28, %s741_s29  }
  0x1b   :  { %s742_s7 = smov [#allocation2]   ;;  %s743_s9 = smov [#allocation7]  }
  0x1c   :  { %s20_s8 = sshll.u32 %s742_s7, 4  ;;  %s41_s1 = sshll.u32 %s743_s9, 4  ;;  %s21_s8 = int_to_ptr.vmem [resolvable:$true] %s20_s8  ;;  %s42_s1 = int_to_ptr.vmem [resolvable:$true] %s41_s1 }
  0x1d   :  { %s656_s10 = scalar_lea.vmem %s21_s8, 128  ;;  %p661_p11 = scmp.lt.s32.totalorder %s21_s8, %s21_s8 }
  0x1e   :  { %p657_p10 = scmp.ne.s32.totalorder %s21_s8, %s656_s10  ;;  %p662_p12 = scmp.lt.s32.totalorder %s656_s10, %s656_s10 }
  0x20   :  { %p663_p13 = por %p662_p12, %p661_p11 }
  0x22   :  { %p664_p0 = pnand %p663_p13, %p657_p10 }
  0x24   :  { %667 = shalt.err (!%p664_p0)
}
  0x25   :  { %23 = dma.hbm_to_vmem [thread:$0]  %s845_s0, 128, %s21_s8, [#allocation3]  }
  0x26   :  { %s676_s13 = scalar_lea.vmem %s42_s1, 8192  ;;  %p681_p2 = scmp.lt.s32.totalorder %s42_s1, %s42_s1 }
  0x27   :  { %p677_p1 = scmp.ne.s32.totalorder %s42_s1, %s676_s13  ;;  %p682_p3 = scmp.lt.s32.totalorder %s676_s13, %s676_s13 }
  0x29   :  { %p683_p4 = por %p682_p3, %p681_p2 }
  0x2b   :  { %p684_p5 = pnand %p683_p4, %p677_p1 }
  0x2d   :  { %687 = shalt.err (!%p684_p5)
}
  0x2e   :  { %47 = dma.hbm_to_vmem [thread:$0]  %s847_s2, 8192, %s42_s1, [#allocation6], %s737_s21, %s737_s21, %s738_s22  }
  0x2f   :  { %s744_s15 = smov [#allocation10]  }
  0x30   :  { %s66_s16 = sshll.u32 %s744_s15, 4  ;;  %s67_s16 = int_to_ptr.vmem [resolvable:$true] %s66_s16 }
  0x31   :  { %s696_s17 = scalar_lea.vmem %s67_s16, 256  ;;  %p701_p7 = scmp.lt.s32.totalorder %s67_s16, %s67_s16 }
  0x32   :  { %p697_p6 = scmp.ne.s32.totalorder %s67_s16, %s696_s17  ;;  %p702_p8 = scmp.lt.s32.totalorder %s696_s17, %s696_s17 }
  0x34   :  { %p703_p9 = por %p702_p8, %p701_p7 }
  0x36   :  { %p704_p10 = pnand %p703_p9, %p697_p6 }
  0x38   :  { %707 = shalt.err (!%p704_p10)
}
  0x39   :  { %69 = dma.hbm_to_vmem [thread:$0]  %s849_s4, 256, %s67_s16, [#allocation9]  }
  0x3a   :  { %728 = dma.done.wait [#allocation3], 128  }
  0x3b   :  { %729 = vsyncadd [#allocation3], 4294967168 }
  0x3c   :  { %730 = dma.done.wait [#allocation6], 8960  }
  0x3d   :  { %731 = vsyncadd [#allocation6], 4294958336 }
  0x3e   :  { %732 = dma.done.wait [#allocation9], 4352  }
  0x3f   :  { %733 = vsyncadd [#allocation9], 4294962944  ;;  %v745_v0 = vmov 0.0   ;;  %vm119_vm0 = vcmask 1040384   ;;  %v103_v1 = vld [vmem:[#allocation5 + $0x28] sm:$0x1]  ;;  %v105_v8 = vlaneseq }
  0x40   :  { %190 = vmatprep.mubr.f32.mxu0 %v745_v0  ;;  %v102_v2 = vld [vmem:[#allocation5 + $0x20] sm:$0x1]  ;;  %v101_v3 = vld [vmem:[#allocation5 + $0x18] sm:$0xff]  ;;  %553 = vmatprep.subr.msk.mxu0 %vm119_vm0, %v103_v1  ;;  %v100_v4 = vld [vmem:[#allocation5 + $0x10] sm:$0xff]  ;;  %vm115_vm1 = vcmask 138240   ;;  %s746_s2 = smov [#allocation11]  }
  0x41   :  { %554 = vmatpush1.msk.msra.mxu0 %vm119_vm0, %v102_v2  ;;  %v99_v5 = vld [vmem:[#allocation5 + $0x8] sm:$0xff]  ;;  %v98_v6 = vld [vmem:[#allocation5] sm:$0xff]  ;;  %v97_v7 = vld [vmem:[#allocation2] sm:$0xff]  ;;  %v106_v9 = vshrl.u32 %v105_v8, 7  ;;  %s542_s4 = sshll.u32 %s746_s2, 4  ;;  %s543_s4 = int_to_ptr.vmem [resolvable:$true] %s542_s4 }
  0x42   :  { %154 = vmatprep.subr.mxu0 %v101_v3  ;;  %v85_v12 = vld [vmem:[#allocation10] ss:$8 sm:$0x3]  ;;  %v273_v20 = vld [vmem:[#allocation7 + $0xf8] sm:$0xff]  ;;  %v272_v21 = vld [vmem:[#allocation7 + $0xf0] sm:$0xff]  ;;  %s708_s19 = scalar_lea.vmem %s543_s4, 128  ;;  %p713_p12 = scmp.lt.s32.totalorder %s543_s4, %s543_s4 }
  0x43   :  { %155 = vmatpush1.msra.mxu0 %v100_v4  ;;  %v798_v10 = vsub.s32 0, %v106_v9  ;;  %v800_v11 = vsub.s32 1, %v106_v9  ;;  %v271_v22 = vld [vmem:[#allocation7 + $0xe8] sm:$0xff]  ;;  %317 = vmatprep.subr.mxu1 %v273_v20  ;;  %v270_v23 = vld [vmem:[#allocation7 + $0xe0] sm:$0xff]  ;;  %v269_v24 = vld [vmem:[#allocation7 + $0xd8] sm:$0xff]  ;;  %p709_p11 = scmp.ne.s32.totalorder %s543_s4, %s708_s19  ;;  %p714_p13 = scmp.lt.s32.totalorder %s708_s19, %s708_s19 }
  0x44   :  { %156 = vmatprep.subr.mxu0 %v99_v5  ;;  %318 = vmatpush1.msra.mxu1 %v272_v21  ;;  %v268_v25 = vld [vmem:[#allocation7 + $0xd0] sm:$0xff]  ;;  %v267_v26 = vld [vmem:[#allocation7 + $0xc8] sm:$0xff]  ;;  %v266_v27 = vld [vmem:[#allocation7 + $0xc0] sm:$0xff] }
  0x45   :  { %157 = vmatpush1.msra.mxu0 %v98_v6  ;;  %v108_v13 = vrot.slane %v85_v12, %v798_v10  ;;  %v112_v14 = vrot.slane %v85_v12, %v800_v11  ;;  %319 = vmatprep.subr.mxu1 %v271_v22  ;;  %v265_v28 = vld [vmem:[#allocation7 + $0xb8] sm:$0xff]  ;;  %v264_v29 = vld [vmem:[#allocation7 + $0xb0] sm:$0xff]  ;;  %v263_v30 = vld [vmem:[#allocation7 + $0xa8] sm:$0xff]  ;;  %p715_p0 = por %p714_p13, %p713_p12 }
  0x46   :  { %555 = vmatmul.mubr.msk.f32.vlgmr.msra.gmra.mxu0 %vm115_vm1, %v97_v7  ;;  %320 = vmatpush1.msra.mxu1 %v270_v23  ;;  %v262_v31 = vld [vmem:[#allocation7 + $0xa0] sm:$0xff]  ;;  %v261_v32 = vld [vmem:[#allocation7 + $0x98] sm:$0xff]  ;;  %v260_v33 = vld [vmem:[#allocation7 + $0x90] sm:$0xff] }
  0x47   :  { %321 = vmatprep.subr.mxu1 %v269_v24  ;;  %v259_v34 = vld [vmem:[#allocation7 + $0x88] sm:$0xff]  ;;  %v258_v35 = vld [vmem:[#allocation7 + $0x80] sm:$0xff]  ;;  %v257_v36 = vld [vmem:[#allocation7 + $0x78] sm:$0xff]  ;;  %p716_p1 = pnand %p715_p0, %p709_p11 }
  0x48   :  { %322 = vmatpush1.msra.mxu1 %v268_v25  ;;  %v256_v37 = vld [vmem:[#allocation7 + $0x70] sm:$0xff]  ;;  %v255_v38 = vld [vmem:[#allocation7 + $0x68] sm:$0xff]  ;;  %v254_v39 = vld [vmem:[#allocation7 + $0x60] sm:$0xff] }
  0x49   :  { %323 = vmatprep.subr.mxu1 %v267_v26  ;;  %v253_v40 = vld [vmem:[#allocation7 + $0x58] sm:$0xff]  ;;  %v252_v41 = vld [vmem:[#allocation7 + $0x50] sm:$0xff]  ;;  %v251_v42 = vld [vmem:[#allocation7 + $0x48] sm:$0xff] }
  0x4a   :  { %324 = vmatpush1.msra.mxu1 %v266_v27  ;;  %v250_v43 = vld [vmem:[#allocation7 + $0x40] sm:$0xff]  ;;  %v249_v44 = vld [vmem:[#allocation7 + $0x38] sm:$0xff]  ;;  %v248_v45 = vld [vmem:[#allocation7 + $0x30] sm:$0xff] }
  0x4b   :  { %325 = vmatprep.subr.mxu1 %v265_v28  ;;  %v247_v46 = vld [vmem:[#allocation7 + $0x28] sm:$0xff]  ;;  %v246_v47 = vld [vmem:[#allocation7 + $0x20] sm:$0xff]  ;;  %v245_v48 = vld [vmem:[#allocation7 + $0x18] sm:$0xff] }
  0x4c   :  { %326 = vmatpush1.msra.mxu1 %v264_v29  ;;  %v244_v49 = vld [vmem:[#allocation7 + $0x10] sm:$0xff]  ;;  %v243_v50 = vld [vmem:[#allocation7 + $0x8] sm:$0xff]  ;;  %v242_v51 = vld [vmem:[#allocation7] sm:$0xff] }
  0x4d   :  { %327 = vmatprep.subr.mxu1 %v263_v30  ;;  %v305_v52 = vld [vmem:[#allocation7 + $0x1f8] sm:$0xff]  ;;  %v304_v53 = vld [vmem:[#allocation7 + $0x1f0] sm:$0xff]  ;;  %v303_v54 = vld [vmem:[#allocation7 + $0x1e8] sm:$0xff] }
  0x4e   :  { %328 = vmatpush1.msra.mxu1 %v262_v31  ;;  %v302_v55 = vld [vmem:[#allocation7 + $0x1e0] sm:$0xff]  ;;  %v301_v56 = vld [vmem:[#allocation7 + $0x1d8] sm:$0xff]  ;;  %v300_v0 = vld [vmem:[#allocation7 + $0x1d0] sm:$0xff] }
  0x4f   :  { %329 = vmatprep.subr.mxu1 %v261_v32  ;;  %v299_v1 = vld [vmem:[#allocation7 + $0x1c8] sm:$0xff]  ;;  %v298_v2 = vld [vmem:[#allocation7 + $0x1c0] sm:$0xff]  ;;  %v297_v3 = vld [vmem:[#allocation7 + $0x1b8] sm:$0xff] }
  0x50   :  { %330 = vmatpush1.msra.mxu1 %v260_v33  ;;  %v296_v4 = vld [vmem:[#allocation7 + $0x1b0] sm:$0xff]  ;;  %v295_v5 = vld [vmem:[#allocation7 + $0x1a8] sm:$0xff]  ;;  %v294_v6 = vld [vmem:[#allocation7 + $0x1a0] sm:$0xff] }
  0x51   :  { %331 = vmatprep.subr.mxu1 %v259_v34  ;;  %v293_v7 = vld [vmem:[#allocation7 + $0x198] sm:$0xff]  ;;  %v292_v8 = vld [vmem:[#allocation7 + $0x190] sm:$0xff]  ;;  %v291_v9 = vld [vmem:[#allocation7 + $0x188] sm:$0xff] }
  0x52   :  { %332 = vmatpush1.msra.mxu1 %v258_v35  ;;  %v290_v12 = vld [vmem:[#allocation7 + $0x180] sm:$0xff]  ;;  %v281_v21 = vld [vmem:[#allocation7 + $0x138] sm:$0xff]  ;;  %v280_v22 = vld [vmem:[#allocation7 + $0x130] sm:$0xff] }
  0x53   :  { %333 = vmatprep.subr.mxu1 %v257_v36  ;;  %v282_v20 = vld [vmem:[#allocation7 + $0x140] sm:$0xff]  ;;  %v279_v23 = vld [vmem:[#allocation7 + $0x128] sm:$0xff]  ;;  %v277_v25 = vld [vmem:[#allocation7 + $0x118] sm:$0xff] }
  0x54   :  { %334 = vmatpush1.msra.mxu1 %v256_v37  ;;  %v278_v24 = vld [vmem:[#allocation7 + $0x120] sm:$0xff]  ;;  %v276_v26 = vld [vmem:[#allocation7 + $0x110] sm:$0xff]  ;;  %v275_v27 = vld [vmem:[#allocation7 + $0x108] sm:$0xff] }
  0x55   :  { %335 = vmatprep.subr.mxu1 %v255_v38  ;;  %v274_v28 = vld [vmem:[#allocation7 + $0x100] sm:$0xff] }
  0x56   :  { %336 = vmatpush1.msra.mxu1 %v254_v39  ;;  %v87_v32 = vld [vmem:[#allocation10 + $0x1] ss:$8 sm:$0x3]  ;;  %v89_v33 = vld [vmem:[#allocation10 + $0x2] ss:$8 sm:$0x3] }
  0x57   :  { %337 = vmatprep.subr.mxu1 %v253_v40  ;;  %v218_v34 = vrot.slane %v87_v32, %v798_v10  ;;  %v222_v35 = vrot.slane %v87_v32, %v800_v11  ;;  %v231_v38 = vrot.slane %v89_v33, %v798_v10  ;;  %v235_v39 = vrot.slane %v89_v33, %v800_v11 }
  0x58   :  { %338 = vmatpush1.msra.mxu1 %v252_v41 }
  0x59   :  { %339 = vmatprep.subr.mxu1 %v251_v42 }
  0x5a   :  { %340 = vmatpush1.msra.mxu1 %v250_v43 }
  0x5b   :  { %341 = vmatprep.subr.mxu1 %v249_v44 }
  0x5c   :  { %342 = vmatpush1.msra.mxu1 %v248_v45 }
  0x5d   :  { %343 = vmatprep.subr.mxu1 %v247_v46 }
  0x5e   :  { %344 = vmatpush1.msra.mxu1 %v246_v47  ;;  %v91_v47 = vld [vmem:[#allocation10 + $0x3] ss:$8 sm:$0x3] }
  0x5f   :  { %345 = vmatprep.subr.mxu1 %v245_v48  ;;  %v310_v48 = vrot.slane %v91_v47, %v798_v10 }
  0x60   :  { %346 = vmatpush1.msra.mxu1 %v244_v49  ;;  %v314_v49 = vrot.slane %v91_v47, %v800_v11 }
  0x61   :  { %347 = vmatprep.subr.mxu1 %v243_v50 }
  0x62   :  { %348 = vmatpush1.msra.mxu1 %v242_v51 }
  0x63   :  { %349 = vmatprep.subr.mxu1 %v305_v52 }
  0x64   :  { %350 = vmatpush2.msra.mxu1 %v304_v53 }
  0x65   :  { %351 = vmatprep.subr.mxu1 %v303_v54 }
  0x66   :  { %352 = vmatpush2.msra.mxu1 %v302_v55  ;;  %v463_v55 = vld [vmem:[#allocation8 + $0xf8] sm:$0xff] }
  0x67   :  { %353 = vmatprep.subr.mxu1 %v301_v56  ;;  %v447_v56 = vld [vmem:[#allocation8 + $0x78] sm:$0xff]  ;;  %556 = vmatprep.subr.mxu0 %v463_v55 }
  0x68   :  { %354 = vmatpush2.msra.mxu1 %v300_v0  ;;  %557 = vmatpush3.msra.mxu0 %v447_v56 }
  0x69   :  { %355 = vmatprep.subr.mxu1 %v299_v1 }
  0x6a   :  { %356 = vmatpush2.msra.mxu1 %v298_v2 }
  0x6b   :  { %357 = vmatprep.subr.mxu1 %v297_v3  ;;  %v445_v3 = vld [vmem:[#allocation8 + $0x68] sm:$0xff] }
  0x6c   :  { %358 = vmatpush2.msra.mxu1 %v296_v4  ;;  %v460_v4 = vld [vmem:[#allocation8 + $0xe0] sm:$0xff] }
  0x6d   :  { %359 = vmatprep.subr.mxu1 %v295_v5  ;;  %v444_v5 = vld [vmem:[#allocation8 + $0x60] sm:$0xff] }
  0x6e   :  { %360 = vmatpush2.msra.mxu1 %v294_v6  ;;  %v459_v6 = vld [vmem:[#allocation8 + $0xd8] sm:$0xff] }
  0x6f   :  { %361 = vmatprep.subr.mxu1 %v293_v7  ;;  %v443_v7 = vld [vmem:[#allocation8 + $0x58] sm:$0xff] }
  0x70   :  { %362 = vmatpush2.msra.mxu1 %v292_v8  ;;  %v458_v8 = vld [vmem:[#allocation8 + $0xd0] sm:$0xff] }
  0x71   :  { %363 = vmatprep.subr.mxu1 %v291_v9  ;;  %v442_v9 = vld [vmem:[#allocation8 + $0x50] sm:$0xff] }
  0x72   :  { %364 = vmatpush2.msra.mxu1 %v290_v12  ;;  %v457_v12 = vld [vmem:[#allocation8 + $0xc8] sm:$0xff] }
 0x106   :  { %v192_v15 = vpop.f32.mrf.mxu0 }
 0x107   :  { %v804_v17 = vadd.f32 %v192_v15, %v108_v13  ;;  %v289_v13 = vld [vmem:[#allocation7 + $0x178] sm:$0xff]  ;;  %v287_v15 = vld [vmem:[#allocation7 + $0x168] sm:$0xff] }
 0x108   :  { %v194_v16 = vpop.f32.mrf.mxu0  ;;  %365 = vmatprep.subr.mxu1 %v289_v13  ;;  %v441_v13 = vld [vmem:[#allocation8 + $0x48] sm:$0xff] }
 0x109   :  { %v806_v18 = vadd.f32 %v194_v16, %v112_v14  ;;  %v288_v14 = vld [vmem:[#allocation7 + $0x170] sm:$0xff]  ;;  %v286_v16 = vld [vmem:[#allocation7 + $0x160] sm:$0xff] }
 0x10a   :  { %366 = vmatpush2.msra.mxu1 %v288_v14  ;;  %v456_v14 = vld [vmem:[#allocation8 + $0xc0] sm:$0xff] }
 0x10b   :  { %v197_v19 = vadd.f32 %v806_v18, %v804_v17  ;;  %367 = vmatprep.subr.mxu1 %v287_v15  ;;  %v440_v15 = vld [vmem:[#allocation8 + $0x40] sm:$0xff] }
 0x10c   :  { %368 = vmatpush2.msra.mxu1 %v286_v16  ;;  %v455_v16 = vld [vmem:[#allocation8 + $0xb8] sm:$0xff] }
 0x10d   :  { %198 = vadd.xlane.f32.xlu0 %v197_v19  ;;  %v283_v19 = vld [vmem:[#allocation7 + $0x148] sm:$0xff] }
 0x196   :  { %v199_v57 = vpop.xlane.xlu0 %198 }
 0x197   :  { %v201_v58 = vmul.f32 0.00390625, %v199_v57  ;;  %v462_v57 = vld [vmem:[#allocation8 + $0xf0] sm:$0xff] }
 0x198   :  { %558 = vmatprep.subr.mxu0 %v462_v57 }
 0x199   :  { %v811_v59 = vsub.f32 %v804_v17, %v201_v58  ;;  %v814_v60 = vsub.f32 %v806_v18, %v201_v58  ;;  %v285_v17 = vld [vmem:[#allocation7 + $0x158] sm:$0xff]  ;;  %v284_v18 = vld [vmem:[#allocation7 + $0x150] sm:$0xff] }
 0x19a   :  { %369 = vmatprep.subr.mxu1 %v285_v17  ;;  %v446_v58 = vld [vmem:[#allocation8 + $0x70] sm:$0xff]  ;;  %v439_v17 = vld [vmem:[#allocation8 + $0x38] sm:$0xff] }
 0x19b   :  { %v204_v61 = vmul.f32 %v811_v59, %v811_v59  ;;  %v205_v62 = vmul.f32 %v814_v60, %v814_v60  ;;  %370 = vmatpush2.msra.mxu1 %v284_v18  ;;  %559 = vmatpush3.msra.mxu0 %v446_v58  ;;  %v454_v18 = vld [vmem:[#allocation8 + $0xb0] sm:$0xff] }
 0x19c   :  { %371 = vmatprep.subr.mxu1 %v283_v19  ;;  %v438_v19 = vld [vmem:[#allocation8 + $0x30] sm:$0xff] }
 0x19d   :  { %v206_v63 = vadd.f32 %v205_v62, %v204_v61  ;;  %372 = vmatpush2.msra.mxu1 %v282_v20  ;;  %v453_v20 = vld [vmem:[#allocation8 + $0xa8] sm:$0xff] }
 0x19e   :  { %373 = vmatprep.subr.mxu1 %v281_v21  ;;  %v437_v21 = vld [vmem:[#allocation8 + $0x28] sm:$0xff] }
 0x19f   :  { %207 = vadd.xlane.f32.xlu0 %v206_v63  ;;  %374 = vmatpush2.msra.mxu1 %v280_v22  ;;  %v452_v22 = vld [vmem:[#allocation8 + $0xa0] sm:$0xff] }
 0x1a0   :  { %375 = vmatprep.subr.mxu1 %v279_v23  ;;  %v436_v23 = vld [vmem:[#allocation8 + $0x20] sm:$0xff] }
 0x1a1   :  { %376 = vmatpush2.msra.mxu1 %v278_v24  ;;  %v451_v24 = vld [vmem:[#allocation8 + $0x98] sm:$0xff] }
 0x1a2   :  { %377 = vmatprep.subr.mxu1 %v277_v25  ;;  %v435_v25 = vld [vmem:[#allocation8 + $0x18] sm:$0xff] }
 0x1a3   :  { %378 = vmatpush2.msra.mxu1 %v276_v26  ;;  %v450_v26 = vld [vmem:[#allocation8 + $0x90] sm:$0xff] }
 0x1a4   :  { %379 = vmatprep.subr.mxu1 %v275_v27  ;;  %v434_v27 = vld [vmem:[#allocation8 + $0x10] sm:$0xff] }
 0x1a5   :  { %380 = vmatpush2.msra.mxu1 %v274_v28  ;;  %v449_v28 = vld [vmem:[#allocation8 + $0x88] sm:$0xff] }
 0x228   :  { %v208_v29 = vpop.xlane.xlu0 %207 }
 0x229   :  { %v209_v30 = vmul.f32 0.00390625, %v208_v29  ;;  %v433_v29 = vld [vmem:[#allocation8 + $0x8] sm:$0xff] }
 0x22b   :  { %v210_v31 = vadd.f32 1e-05, %v209_v30  ;;  %v448_v30 = vld [vmem:[#allocation8 + $0x80] sm:$0xff] }
 0x22d   :  { %602 = vrsqrt.f32 %v210_v31  ;;  %v432_v31 = vld [vmem:[#allocation8] sm:$0xff] }
 0x23a   :  { %v603_v36 = vpop.eup %602 }
 0x23b   :  { %v213_v37 = vmul.f32 %v603_v36, %v814_v60  ;;  %v212_v40 = vmul.f32 %v603_v36, %v811_v59  ;;  %v461_v59 = vld [vmem:[#allocation8 + $0xe8] sm:$0xff] }
 0x23c   :  { %560 = vmatprep.subr.mxu0 %v461_v59  ;;  %v95_v36 = vld [vmem:[#allocation10 + $0x5] ss:$8 sm:$0x3] }
 0x23d   :  { %v226_v41 = vmul.f32 %v222_v35, %v213_v37  ;;  %v225_v42 = vmul.f32 %v218_v34, %v212_v40  ;;  %561 = vmatpush3.msra.mxu0 %v445_v3  ;;  %v93_v35 = vld [vmem:[#allocation10 + $0x4] ss:$8 sm:$0x3] }
 0x23e   :  { %562 = vmatprep.subr.mxu0 %v460_v4  ;;  %v408_v37 = vrot.slane %v93_v35, %v798_v10 }
 0x23f   :  { %v239_v43 = vadd.f32 %v235_v39, %v226_v41  ;;  %v238_v44 = vadd.f32 %v231_v38, %v225_v42  ;;  %563 = vmatpush3.msra.mxu0 %v444_v5  ;;  %v412_v38 = vrot.slane %v93_v35, %v800_v11  ;;  %v421_v41 = vrot.slane %v95_v36, %v798_v10 }
 0x240   :  { %564 = vmatprep.subr.mxu0 %v459_v6  ;;  %v425_v42 = vrot.slane %v95_v36, %v800_v11 }
 0x241   :  { %v241_v45 = vmax.f32 %v239_v43, 0.0  ;;  %v240_v46 = vmax.f32 %v238_v44, 0.0  ;;  %565 = vmatpush3.msra.mxu0 %v443_v7 }
 0x242   :  { %566 = vmatprep.subr.mxu0 %v458_v8 }
 0x243   :  { %381 = vmatprep.mubr.f32.mxu1 %v241_v45  ;;  %567 = vmatpush3.msra.mxu0 %v442_v9 }
 0x244   :  { %382 = vmatmul.mubr.f32.vlgmr.msra.gmra.mxu1 %v240_v46  ;;  %568 = vmatprep.subr.mxu0 %v457_v12 }
 0x245   :  { %569 = vmatpush3.msra.mxu0 %v441_v13 }
 0x246   :  { %570 = vmatprep.subr.mxu0 %v456_v14 }
 0x247   :  { %571 = vmatpush3.msra.mxu0 %v440_v15 }
 0x248   :  { %572 = vmatprep.subr.mxu0 %v455_v16 }
 0x249   :  { %573 = vmatpush3.msra.mxu0 %v439_v17 }
 0x24a   :  { %574 = vmatprep.subr.mxu0 %v454_v18 }
 0x24b   :  { %575 = vmatpush3.msra.mxu0 %v438_v19 }
 0x24c   :  { %576 = vmatprep.subr.mxu0 %v453_v20 }
 0x24d   :  { %577 = vmatpush3.msra.mxu0 %v437_v21 }
 0x24e   :  { %578 = vmatprep.subr.mxu0 %v452_v22 }
 0x24f   :  { %579 = vmatpush3.msra.mxu0 %v436_v23 }
 0x250   :  { %580 = vmatprep.subr.mxu0 %v451_v24 }
 0x251   :  { %581 = vmatpush3.msra.mxu0 %v435_v25 }
 0x252   :  { %582 = vmatprep.subr.mxu0 %v450_v26 }
 0x253   :  { %583 = vmatpush3.msra.mxu0 %v434_v27 }
 0x254   :  { %584 = vmatprep.subr.mxu0 %v449_v28 }
 0x255   :  { %585 = vmatpush3.msra.mxu0 %v433_v29 }
 0x256   :  { %586 = vmatprep.subr.mxu0 %v448_v30 }
 0x257   :  { %587 = vmatpush3.msra.mxu0 %v432_v31 }
 0x304   :  { %v383_v50 = vpop.f32.mrf.mxu1 }
 0x305   :  { %v384_v52 = vadd.f32 %v383_v50, %v310_v48 }
 0x306   :  { %v385_v51 = vpop.f32.mrf.mxu1 }
 0x307   :  { %v386_v53 = vadd.f32 %v385_v51, %v314_v49  ;;  %v96_v51 = vld [vmem:[#allocation10 + $0x6] ss:$0 sm:$0xff] }
 0x309   :  { %v388_v54 = vadd.f32 %v386_v53, %v384_v52 }
 0x30b   :  { %389 = vadd.xlane.f32.xlu1 %v388_v54 }
 0x394   :  { %v390_v60 = vpop.xlane.xlu1 %389 }
 0x395   :  { %v391_v61 = vmul.f32 0.00390625, %v390_v60 }
 0x397   :  { %v828_v62 = vsub.f32 %v384_v52, %v391_v61  ;;  %v830_v63 = vsub.f32 %v386_v53, %v391_v61 }
 0x399   :  { %v394_v0 = vmul.f32 %v828_v62, %v828_v62  ;;  %v395_v1 = vmul.f32 %v830_v63, %v830_v63 }
 0x39b   :  { %v396_v2 = vadd.f32 %v395_v1, %v394_v0 }
 0x39d   :  { %397 = vadd.xlane.f32.xlu1 %v396_v2 }
 0x426   :  { %v398_v32 = vpop.xlane.xlu1 %397 }
 0x427   :  { %v399_v33 = vmul.f32 0.00390625, %v398_v32 }
 0x429   :  { %v400_v34 = vadd.f32 1e-05, %v399_v33 }
 0x42b   :  { %604 = vrsqrt.f32 %v400_v34 }
 0x438   :  { %v605_v39 = vpop.eup %604 }
 0x439   :  { %v403_v40 = vmul.f32 %v605_v39, %v830_v63  ;;  %v402_v43 = vmul.f32 %v605_v39, %v828_v62 }
 0x43b   :  { %v416_v44 = vmul.f32 %v412_v38, %v403_v40  ;;  %v415_v45 = vmul.f32 %v408_v37, %v402_v43 }
 0x43d   :  { %v429_v46 = vadd.f32 %v425_v42, %v416_v44  ;;  %v428_v47 = vadd.f32 %v421_v41, %v415_v45 }
 0x43f   :  { %v431_v48 = vmax.f32 %v429_v46, 0.0  ;;  %v430_v49 = vmax.f32 %v428_v47, 0.0 }
 0x441   :  { %528 = vmatprep.mubr.f32.mxu0 %v431_v48 }
 0x442   :  { %529 = vmatmul.mubr.f32.vlgmr.msra.gmra.mxu0 %v430_v49 }
 0x502   :  { %v588_v50 = vpop.f32.mrf.mxu0 }
 0x504   :  { %v589_v52 = vpop.f32.mrf.mxu0 }
 0x505   :  { %v590_v53 = vadd.f32 %v589_v52, %v588_v50 }
 0x507   :  { %v531_v54 = vadd.f32 %v590_v53, %v96_v51 }
 0x509   :  { %606 = vtanh.f32 %v531_v54 }
 0x516   :  { %v607_v10 = vpop.eup %606 }
 0x517   :  { %535 = vst [vmem:[#allocation11] sm:$0xff] %v607_v10 }
 0x518   :  { %719 = shalt.err (!%p716_p1)
}
 0x519   :  { %545 = dma.vmem_to_hbm [thread:$0]  %s543_s4, 128, %s850_s5, [#allocation4]  }
 0x51a   :  { %734 = dma.done.wait [#allocation4], 128  }
 0x51b   :  { %735 = vsyncadd [#allocation4], 4294967168 }
 0x51c   :  { %549 = vsyncpa [#allocation3], 1 }
 0x51d   :  { %550 = vsyncpa [#allocation6], 1 }
 0x51e   :  { %551 = vsyncpa [#allocation9], 1 }
 0x51f   :  { %552 = vsyncpa [#allocation4], 1 }

</bundles_post_ra>
